<compile_context>
chip_gen: v6e
topology: v6e:2x2x1
jax: 0.10.0
libtpu: 0.0.40
codegen_flags: <defaults>
</compile_context>

<pallas_src>
import functools

import jax
import jax.numpy as jnp
from jax.experimental import pallas as pl
from jax.experimental.pallas import tpu as pltpu

BN_EPS = 1e-5
VMEM_LIMIT = 32 * 1024 * 1024     # explicit scoped-VMEM limit; safe on v5e/v6e/v7x


def _rup(x, m):
    return (x + m - 1) // m * m


def _pick_tile(padded_dim, unit, max_units):
    """Largest tile (multiple of `unit`, <= max_units*unit) dividing padded_dim."""
    q = padded_dim // unit
    best = 1
    for t in range(1, max_units + 1):
        if q % t == 0:
            best = t
    return best * unit


def _apply_act(x, act):
    if act == "relu":
        return jnp.maximum(x, 0.0)
    if act == "tanh":
        return jnp.tanh(x)
    return x


# ----------------------------------------------------------------------------
# Generic tiled matmul kernel (used by conv1 / stride-2 convs / 1x1 convs).
# ----------------------------------------------------------------------------

def _mm_kernel(a_ref, b_ref, bias_ref, o_ref, acc_ref, *, act):
    k = pl.program_id(2)

    @pl.when(k == 0)
    def _():
        acc_ref[...] = jnp.zeros_like(acc_ref)

    acc_ref[...] += jnp.dot(a_ref[...], b_ref[...],
                            preferred_element_type=jnp.float32)

    @pl.when(k == pl.num_programs(2) - 1)
    def _():
        o_ref[...] = _apply_act(acc_ref[...] + bias_ref[...],
                                act).astype(o_ref.dtype)


def matmul_bias_act(a, b, bias, act="none", out_dtype=jnp.bfloat16):
    """out = act(a @ b + bias) — bf16 MXU operands, fp32 accumulation/epilogue."""
    M, K = a.shape
    Kb, N = b.shape
    assert Kb == K
    Kp = _rup(K, 128)
    TK = _pick_tile(Kp, 128, 18)                      # wide K slabs (v6e review item)
    TN = _pick_tile(N, 128, 4) if (N % 128 == 0 and N > 512) else N
    assert N % TN == 0
    TM = min(512, _rup(M, 8))
    Mp = _rup(M, TM)

    a = a.astype(jnp.bfloat16)
    b = b.astype(jnp.bfloat16)
    if (Mp, Kp) != (M, K):
        a = jnp.pad(a, ((0, Mp - M), (0, Kp - K)))
    if Kp != K:
        b = jnp.pad(b, ((0, Kp - K), (0, 0)))
    bias2 = bias.reshape(1, N).astype(jnp.float32)     # no N padding (review item)

    grid = (Mp // TM, N // TN, Kp // TK)
    out = pl.pallas_call(
        functools.partial(_mm_kernel, act=act),
        out_shape=jax.ShapeDtypeStruct((Mp, N), out_dtype),
        grid_spec=pltpu.PrefetchScalarGridSpec(
            num_scalar_prefetch=0,
            grid=grid,
            in_specs=[
                pl.BlockSpec((TM, TK), lambda i, j, k: (i, k)),
                pl.BlockSpec((TK, TN), lambda i, j, k: (k, j)),
                pl.BlockSpec((1, TN), lambda i, j, k: (0, j)),
            ],
            out_specs=pl.BlockSpec((TM, TN), lambda i, j, k: (i, j)),
            scratch_shapes=[pltpu.VMEM((TM, TN), jnp.float32)],
        ),
        compiler_params=pltpu.CompilerParams(
            dimension_semantics=("parallel", "parallel", "arbitrary"),
            vmem_limit_bytes=VMEM_LIMIT),
        cost_estimate=pl.CostEstimate(
            flops=2 * Mp * Kp * N, transcendentals=0,
            bytes_accessed=Mp * Kp * 2 + Kp * N * 2 + Mp * N * 2),
    )(a, b, bias2)
    if Mp != M:
        out = out[:M]
    return out


# ----------------------------------------------------------------------------
# Fused stride-1 3x3 conv ("gather-conv"): in-kernel patch gather, no HBM im2col.
# ----------------------------------------------------------------------------

def pad_flat(x):
    """NHWC activation -> zero-padded (pad=1) row-flattened [R, C] bf16 + static meta.

    Row q = n*Hp*Wp + hp*Wp + wp of the result is the padded pixel (n, hp, wp); tap
    (ti, tj) of the 3x3 window for output (n, ho, wo) is simply row q + ti*Wp + tj.
    A zero tail keeps all in-kernel tap reads in bounds.
    """
    N, H, W, C = x.shape
    Hp, Wp = H + 2, W + 2
    M = N * Hp * Wp
    Mp = _rup(M, 16)
    R = Mp + _rup(2 * Wp + 2, 16)
    xp = jnp.pad(x.astype(jnp.bfloat16), ((0, 0), (1, 1), (1, 1), (0, 0)))
    x2 = jnp.pad(xp.reshape(M, C), ((0, R - M), (0, 0)))
    meta = dict(n=N, h=H, w=W, hp=Hp, wp=Wp, m=M, mp=Mp)
    return x2, meta


def _gconv_kernel(*refs, offs, chunks, act, res_off):
    if res_off is None:
        x_ref, w_ref, b_ref, o_ref = refs
        r_ref = None
    else:
        x_ref, w_ref, b_ref, r_ref, o_ref = refs
    bias = b_ref[...]                                   # (1, TN) f32
    for m0, rows in chunks:                             # static unroll
        acc = None
        for t, off in enumerate(offs):                  # 9 taps, static offsets
            a = x_ref[m0 + off:m0 + off + rows, :]
            p = jnp.dot(a, w_ref[t], preferred_element_type=jnp.float32)
            acc = p if acc is None else acc + p
        acc = acc + bias
        if r_ref is not None:                           # fused residual (skip conn.)
            acc = acc + r_ref[res_off + m0:res_off + m0 + rows, :].astype(jnp.float32)
        o_ref[m0:m0 + rows, :] = _apply_act(acc, act).astype(o_ref.dtype)


def gconv3x3(x2, meta, entry, act="relu", res_x2=None, out_dtype=jnp.bfloat16):
    """Fused 3x3 / stride-1 / pad-1 conv.  Output is computed on the padded grid
    (garbage at the border rows/cols) and the valid region is sliced out after."""
    R, C = x2.shape
    w3, bias = entry["w"], entry["b"]
    taps, Cw, Cout = w3.shape
    assert taps == 9 and Cw == C
    N, H, W = meta["n"], meta["h"], meta["w"]
    Hp, Wp, M, Mp = meta["hp"], meta["wp"], meta["m"], meta["mp"]

    if Cout >= 256 and Cout % 256 == 0:
        n_n, TN = 2, Cout // 2        # 2 parallel lane tiles -> both v7x cores busy
    else:
        n_n, TN = 1, Cout             # full-dim (possibly <128) N block: no padding
    CM = 128 if TN >= 256 else (256 if TN >= 128 else 512)   # bounds acc vreg use
    chunks, m0 = [], 0
    while m0 < Mp:
        rows = min(CM, Mp - m0)
        chunks.append((m0, rows))
        m0 += rows
    offs = tuple(ti * Wp + tj for ti in range(3) for tj in range(3))

    bias2 = bias.reshape(1, Cout).astype(jnp.float32)
    in_specs = [
        pl.BlockSpec((R, C), lambda j: (0, 0)),            # whole padded activation
        pl.BlockSpec((9, C, TN), lambda j: (0, 0, j)),     # per-tap weight slabs
        pl.BlockSpec((1, TN), lambda j: (0, j)),
    ]
    args = [x2, w3, bias2]
    res_off = None
    if res_x2 is not None:
        assert res_x2.shape[1] == Cout
        in_specs.append(pl.BlockSpec((res_x2.shape[0], TN), lambda j: (0, j)))
        args.append(res_x2)
        res_off = Wp + 1              # block input pixel (ho, wo) inside its padding

    out = pl.pallas_call(
        functools.partial(_gconv_kernel, offs=offs, chunks=tuple(chunks),
                          act=act, res_off=res_off),
        out_shape=jax.ShapeDtypeStruct((Mp, Cout), out_dtype),
        grid_spec=pltpu.PrefetchScalarGridSpec(
            num_scalar_prefetch=0,
            grid=(n_n,),
            in_specs=in_specs,
            out_specs=pl.BlockSpec((Mp, TN), lambda j: (0, j)),
        ),
        compiler_params=pltpu.CompilerParams(
            dimension_semantics=("parallel",),
            vmem_limit_bytes=VMEM_LIMIT),
        cost_estimate=pl.CostEstimate(
            flops=2 * Mp * 9 * C * Cout, transcendentals=0,
            bytes_accessed=R * C * 2 + 9 * C * Cout * 2 + Mp * Cout * 2),
    )(*args)
    # Drop the garbage border rows/cols of the padded-grid output.
    return out[:M].reshape(N, Hp, Wp, Cout)[:, :H, :W, :]


# ----------------------------------------------------------------------------
# conv / pool helpers
# ----------------------------------------------------------------------------

def _im2col(x, kh, kw, stride, pad):
    N, H, W, C = x.shape
    xp = jnp.pad(x, ((0, 0), (pad, pad), (pad, pad), (0, 0)))
    Ho = (H + 2 * pad - kh) // stride + 1
    Wo = (W + 2 * pad - kw) // stride + 1
    cols = []
    for i in range(kh):
        for j in range(kw):
            cols.append(xp[:, i:i + stride * Ho:stride,
                           j:j + stride * Wo:stride, :])
    cols = jnp.stack(cols, axis=3)                       # [N, Ho, Wo, kh*kw, C]
    return cols.reshape(N * Ho * Wo, kh * kw * C), (N, Ho, Wo)


def conv2d_im2col(x, entry, stride, pad, act="none"):
    """Strided convs (conv1 7x7/s2, 3x3/s2) via XLA im2col + tiled matmul kernel."""
    kh, kw = entry["kh"], entry["kw"]
    Cout = entry["w"].shape[1]
    cols, (N, Ho, Wo) = _im2col(x, kh, kw, stride, pad)
    out = matmul_bias_act(cols, entry["w"], entry["b"], act=act)
    return out.reshape(N, Ho, Wo, Cout)


def conv1x1(x, entry, stride=1, act="none"):
    if stride != 1:
        x = x[:, ::stride, ::stride, :]
    N, H, W, C = x.shape
    out = matmul_bias_act(x.reshape(N * H * W, C), entry["w"], entry["b"], act=act)
    return out.reshape(N, H, W, -1)


def maxpool_3x3_s2_p1(x):
    # Input is post-ReLU (>= 0) so zero padding preserves the max (review note).
    N, H, W, C = x.shape
    xp = jnp.pad(x, ((0, 0), (1, 1), (1, 1), (0, 0)))
    Ho = (H + 2 - 3) // 2 + 1
    Wo = (W + 2 - 3) // 2 + 1
    out = None
    for i in range(3):
        for j in range(3):
            s = xp[:, i:i + 2 * Ho:2, j:j + 2 * Wo:2, :]
            out = s if out is None else jnp.maximum(out, s)
    return out


# ----------------------------------------------------------------------------
# Fusion head: both 1x1 convs + ReLUs in a single pallas_call.
# ----------------------------------------------------------------------------

def _fusion_kernel(x_ref, w1_ref, b1_ref, w2_ref, b2_ref, o_ref):
    h = jnp.dot(x_ref[...], w1_ref[...], preferred_element_type=jnp.float32)
    h = jnp.maximum(h + b1_ref[...], 0.0).astype(jnp.bfloat16)
    o = jnp.dot(h, w2_ref[...], preferred_element_type=jnp.float32)
    o_ref[...] = jnp.maximum(o + b2_ref[...], 0.0).astype(o_ref.dtype)


def fusion_head(x, e1, e2):
    N, H, W, C = x.shape
    M = N * H * W
    Mp = _rup(M, 8)
    a = x.reshape(M, C).astype(jnp.bfloat16)
    if Mp != M:
        a = jnp.pad(a, ((0, Mp - M), (0, 0)))
    C1 = e1["w"].shape[1]
    C2 = e2["w"].shape[1]
    out = pl.pallas_call(
        _fusion_kernel,
        out_shape=jax.ShapeDtypeStruct((Mp, C2), jnp.bfloat16),
        grid_spec=pltpu.PrefetchScalarGridSpec(
            num_scalar_prefetch=0,
            grid=(1,),
            in_specs=[pl.BlockSpec((Mp, C), lambda i: (0, 0)),
                      pl.BlockSpec((C, C1), lambda i: (0, 0)),
                      pl.BlockSpec((1, C1), lambda i: (0, 0)),
                      pl.BlockSpec((C1, C2), lambda i: (0, 0)),
                      pl.BlockSpec((1, C2), lambda i: (0, 0))],
            out_specs=pl.BlockSpec((Mp, C2), lambda i: (0, 0)),
        ),
        compiler_params=pltpu.CompilerParams(
            dimension_semantics=("arbitrary",),
            vmem_limit_bytes=VMEM_LIMIT),
        cost_estimate=pl.CostEstimate(
            flops=2 * Mp * (C * C1 + C1 * C2), transcendentals=0,
            bytes_accessed=Mp * C * 2 + C * C1 * 2 + C1 * C2 * 2 + Mp * C2 * 2),
    )(a, e1["w"], e1["b"].reshape(1, C1).astype(jnp.float32),
      e2["w"], e2["b"].reshape(1, C2).astype(jnp.float32))
    return out[:M].reshape(N, H, W, C2)


# ----------------------------------------------------------------------------
# Decoder: ConvTranspose2d(k4, s2, p1) as a phase-aligned fused 3x3 conv.
# ----------------------------------------------------------------------------

def deconv_s2(x, entry):
    """out[n, 2m+ph, 2w+pw, c]: all 4 phases are computed at position (m, w) by the
    fused 3x3 conv (weights zero-padded per phase); one pixel-shuffle transpose."""
    N, H, W, C = x.shape
    Cout = entry["cout"]
    x2, meta = pad_flat(x)
    y = gconv3x3(x2, meta, entry, act="relu")            # [N, H, W, 4*Cout]
    y = y.reshape(N, H, W, 2, 2, Cout)
    return y.transpose(0, 1, 3, 2, 4, 5).reshape(N, 2 * H, 2 * W, Cout)


# ----------------------------------------------------------------------------
# Parameter preparation (BN folding, layout packing — hoisted out of forward()).
# ----------------------------------------------------------------------------

def fold_bn(w, bn):
    scale = bn["gamma"] / jnp.sqrt(bn["var"] + BN_EPS)
    return w * scale[:, None, None, None], bn["beta"] - bn["mean"] * scale


def _conv_entry(w, b):
    """[Cout, Cin, kh, kw] -> im2col matmul layout [kh*kw*Cin, Cout]."""
    Cout, Cin, kh, kw = w.shape
    wmat = jnp.transpose(w, (2, 3, 1, 0)).reshape(kh * kw * Cin, Cout)
    return dict(w=wmat.astype(jnp.bfloat16), b=b.astype(jnp.float32), kh=kh, kw=kw)


def _conv3_entry(w, b):
    """[Cout, Cin, 3, 3] -> per-tap gather-conv layout [9, Cin, Cout]."""
    Cout, Cin, kh, kw = w.shape
    assert kh == 3 and kw == 3
    wmat = jnp.transpose(w, (2, 3, 1, 0)).reshape(9, Cin, Cout)
    return dict(w=wmat.astype(jnp.bfloat16), b=b.astype(jnp.float32))


def _conv1x1_entry(w, b):
    Cout, Cin = w.shape[0], w.shape[1]
    return dict(w=w.reshape(Cout, Cin).T.astype(jnp.bfloat16),
                b=b.astype(jnp.float32))


def _deconv_entry(w_t, b):
    """ConvTranspose2d weight [Cin, Cout, 4, 4] -> phase-aligned 3x3 taps
    [9, Cin, 4*Cout] (output columns ordered (ph, pw, cout)).

    Output (2m+ph, 2w+pw) uses x[m-1+dr+ph, w-1+ds+pw] * w_t[..., KH[ph][dr], KW[pw][ds]]
    with KH/KW[0] = (3, 1), KH/KW[1] = (2, 0); as taps of the 3x3 window centered at
    (m, w) that is tap (ph+dr, pw+ds) — unused taps of each phase stay zero.
    """
    Cin, Cout = w_t.shape[0], w_t.shape[1]
    KIDX = [(3, 1), (2, 0)]
    wtap = jnp.zeros((3, 3, Cin, 4 * Cout), jnp.float32)
    for ph in range(2):
        for pw in range(2):
            c0 = (ph * 2 + pw) * Cout
            for dr in range(2):
                for ds in range(2):
                    wtap = wtap.at[ph + dr, pw + ds, :, c0:c0 + Cout].set(
                        w_t[:, :, KIDX[ph][dr], KIDX[pw][ds]])
    return dict(w=wtap.reshape(9, Cin, 4 * Cout).astype(jnp.bfloat16),
                b=jnp.tile(b, 4).astype(jnp.float32), cout=Cout)


def prepare_params(params):
    P = {}
    w, b = fold_bn(params["conv1_w"], params["bn1"])
    P["conv1"] = _conv_entry(w, b)

    layers = []
    for layer in params["layers"]:
        blocks = []
        for blk in layer:
            e = {"stride": blk["stride"]}
            w, b = fold_bn(blk["conv1_w"], blk["bn1"])
            e["c1"] = _conv3_entry(w, b) if blk["stride"] == 1 else _conv_entry(w, b)
            w, b = fold_bn(blk["conv2_w"], blk["bn2"])
            e["c2"] = _conv3_entry(w, b)
            if "down_w" in blk:
                w, b = fold_bn(blk["down_w"], blk["down_bn"])
                e["down"] = _conv1x1_entry(w, b)
            blocks.append(e)
        layers.append(blocks)
    P["layers"] = layers

    P["fus1"] = _conv1x1_entry(params["fus1_w"], params["fus1_b"])
    P["fus2"] = _conv1x1_entry(params["fus2_w"], params["fus2_b"])
    P["deconv"] = [_deconv_entry(wt, bt) for wt, bt in params["deconv"]]
    P["out"] = _conv3_entry(params["out_w"], params["out_b"])
    return P


# ----------------------------------------------------------------------------
# Full forward pass
# ----------------------------------------------------------------------------

def basic_block(x, e):
    if e["stride"] == 1 and "down" not in e:
        # Identity block: both convs fused; the skip connection is added in-kernel
        # from the (already resident) padded block input.
        x2, meta = pad_flat(x)
        h = gconv3x3(x2, meta, e["c1"], act="relu")
        h2, _ = pad_flat(h)
        return gconv3x3(h2, meta, e["c2"], act="relu", res_x2=x2)
    # Downsampling block: stride-2 conv1 (im2col path) + 1x1/s2 projection shortcut.
    h = conv2d_im2col(x, e["c1"], stride=e["stride"], pad=1, act="relu")
    idn = conv1x1(x, e["down"], stride=e["stride"]) if "down" in e else x
    h2, meta = pad_flat(h)
    y = gconv3x3(h2, meta, e["c2"], act="none")
    return jnp.maximum(y + idn, 0.0).astype(jnp.bfloat16)


def forward(x, P):
    """x: NCHW float32; returns NCHW [N, 3, H, W] = concat(gray, ab)."""
    if x.shape[1] == 3:
        gray = (0.299 * x[:, 0] + 0.587 * x[:, 1] + 0.114 * x[:, 2])[:, None]
    else:
        gray = x
    x3 = jnp.concatenate([gray, gray, gray], axis=1)          # repeat(1, 3, 1, 1)
    h = jnp.transpose(x3, (0, 2, 3, 1)).astype(jnp.bfloat16)  # NHWC, bf16 acts

    # ---- ResNet18 feature extractor (children()[:-2]) ----
    h = conv2d_im2col(h, P["conv1"], stride=2, pad=3, act="relu")
    h = maxpool_3x3_s2_p1(h)
    for layer in P["layers"]:
        for blk in layer:
            h = basic_block(h, blk)

    # ---- fusion: two 1x1 convs + ReLU, one pallas_call ----
    h = fusion_head(h, P["fus1"], P["fus2"])

    # ---- decoder: 5x (ConvTranspose2d k4 s2 p1 + ReLU), Conv2d 3x3 + Tanh ----
    for d in P["deconv"]:
        h = deconv_s2(h, d)
    x2, meta = pad_flat(h)
    ab = gconv3x3(x2, meta, P["out"], act="tanh", out_dtype=jnp.float32)

    ab_nchw = jnp.transpose(ab, (0, 3, 1, 2))
    return jnp.concatenate([gray, ab_nchw], axis=1)


# ----------------------------------------------------------------------------
# Synthetic parameters
# ----------------------------------------------------------------------------

def init_params(key):
    keys = iter(jax.random.split(key, 256))

    def nk():
        return next(keys)

    def conv_w(co, ci, kh, kw):
        fan_in = float(ci * kh * kw)
        return jax.random.normal(nk(), (co, ci, kh, kw), jnp.float32) * (
            0.5 / jnp.sqrt(jnp.float32(fan_in)))

    def bias(c):
        return 0.01 * jax.random.normal(nk(), (c,), jnp.float32)

    def bn(c):
        return dict(
            gamma=1.0 + 0.1 * jax.random.normal(nk(), (c,), jnp.float32),
            beta=0.05 * jax.random.normal(nk(), (c,), jnp.float32),
            mean=0.05 * jax.random.normal(nk(), (c,), jnp.float32),
            var=jnp.abs(1.0 + 0.1 * jax.random.normal(nk(), (c,), jnp.float32)),
        )

    params = {"conv1_w": conv_w(64, 3, 7, 7), "bn1": bn(64)}

    layer_cfg = [
        (64, 64, (1, 1)),
        (64, 128, (2, 1)),
        (128, 256, (2, 1)),
        (256, 512, (2, 1)),
    ]
    layers = []
    for cin, cout, strides in layer_cfg:
        blocks = []
        in_c = cin
        for s in strides:
            blk = dict(
                stride=s,
                conv1_w=conv_w(cout, in_c, 3, 3), bn1=bn(cout),
                conv2_w=conv_w(cout, cout, 3, 3), bn2=bn(cout),
            )
            if s != 1 or in_c != cout:
                blk["down_w"] = conv_w(cout, in_c, 1, 1)
                blk["down_bn"] = bn(cout)
            blocks.append(blk)
            in_c = cout
        layers.append(blocks)
    params["layers"] = layers

    params["fus1_w"] = conv_w(256, 512, 1, 1)
    params["fus1_b"] = bias(256)
    params["fus2_w"] = conv_w(128, 256, 1, 1)
    params["fus2_b"] = bias(128)

    deconv = []
    for ci, co in [(128, 128), (128, 64), (64, 32), (32, 16), (16, 8)]:
        wt = jax.random.normal(nk(), (ci, co, 4, 4), jnp.float32) * (
            0.5 / jnp.sqrt(jnp.float32(ci * 16)))
        deconv.append((wt, bias(co)))
    params["deconv"] = deconv

    params["out_w"] = conv_w(2, 8, 3, 3)
    params["out_b"] = bias(2)
    return params


# ----------------------------------------------------------------------------
# Self-check of the fused conv / deconv building blocks against lax references
# (same bf16-rounded operands, so only accumulation order / output dtype differ).
# ----------------------------------------------------------------------------

def _self_check():
    k1, k2, k3 = jax.random.split(jax.random.PRNGKey(1), 3)
    x = jax.random.normal(k1, (1, 6, 5, 16), jnp.float32)
    xb = x.astype(jnp.bfloat16).astype(jnp.float32)

    # fused 3x3 stride-1 conv
    w = jax.random.normal(k2, (8, 16, 3, 3), jnp.float32) * 0.2
    b = 0.1 * jax.random.normal(k3, (8,), jnp.float32)
    ent = _conv3_entry(w, b)
    x2, meta = pad_flat(x)
    got = gconv3x3(x2, meta, ent, act="none", out_dtype=jnp.float32)
    wb = w.astype(jnp.bfloat16).astype(jnp.float32)
    ref = jax.lax.conv_general_dilated(
        xb, jnp.transpose(wb, (2, 3, 1, 0)), (1, 1), ((1, 1), (1, 1)),
        dimension_numbers=("NHWC", "HWIO", "NHWC")) + b
    assert float(jnp.max(jnp.abs(got - ref))) < 1e-2, "fused 3x3 conv mismatch"

    # ConvTranspose2d(16, 8, 4, stride=2, padding=1) + ReLU
    wt = jax.random.normal(k2, (16, 8, 4, 4), jnp.float32) * 0.2
    dent = _deconv_entry(wt, b)
    got = deconv_s2(x, dent).astype(jnp.float32)
    wtb = wt.astype(jnp.bfloat16).astype(jnp.float32)
    wflip = jnp.transpose(wtb[:, :, ::-1, ::-1], (2, 3, 0, 1))
    ref = jax.lax.conv_general_dilated(
        xb, wflip, (1, 1), ((2, 2), (2, 2)), lhs_dilation=(2, 2),
        dimension_numbers=("NHWC", "HWIO", "NHWC")) + b
    ref = jnp.maximum(ref, 0.0)
    assert got.shape == ref.shape
    assert float(jnp.max(jnp.abs(got - ref))) < 1e-1, "deconv mismatch"


if __name__ == "__main__":
    _self_check()

    key = jax.random.PRNGKey(0)
    pkey, xkey = jax.random.split(key)
    params = init_params(pkey)
    prepped = prepare_params(params)

    # NCHW RGB image, 64x64 so the /32 encoder and the x32 decoder round-trip exactly.
    x = jax.random.uniform(xkey, (2, 3, 64, 64), jnp.float32)

    fwd = jax.jit(lambda inp: forward(inp, prepped))
    out = jax.block_until_ready(fwd(x))

    assert out.shape == (2, 3, 64, 64), out.shape
    assert bool(jnp.all(jnp.isfinite(out)))
    print("KERNEL_OK")
</pallas_src>

<mosaic_0001>
module attributes {stable_mosaic.version = 11 : i64} {
  func.func @_gconv_kernel(%arg0: i32, %arg1: memref<80x16xbf16, #tpu.memory_space<vmem>>, %arg2: memref<9x16x8xbf16, #tpu.memory_space<vmem>>, %arg3: memref<1x8xf32, #tpu.memory_space<vmem>>, %arg4: memref<64x8xf32, #tpu.memory_space<vmem>>) attributes {dimension_semantics = [#tpu.dimension_semantics<parallel>], iteration_bounds = array<i64: 1>, scalar_prefetch = 0 : i64, scratch_operands = 0 : i64, tpu.core_type = #tpu.core_type<tc>, window_params = [{pipeline_mode = #tpu.pipeline_mode<synchronous>, transform_indices = @transform_0, window_bounds = array<i64: 80, 16>}, {transform_indices = @transform_1, window_bounds = array<i64: 9, 16, 8>}, {transform_indices = @transform_2, window_bounds = array<i64: 1, 8>}, {transform_indices = @transform_3, window_bounds = array<i64: 64, 8>}]} {
    %c0 = arith.constant 0 : index
    %c0_0 = arith.constant 0 : index
    %0 = vector.load %arg3[%c0, %c0_0] : memref<1x8xf32, #tpu.memory_space<vmem>>, vector<1x8xf32>
    %c0_1 = arith.constant 0 : index
    %c0_2 = arith.constant 0 : index
    %1 = vector.load %arg1[%c0_1, %c0_2] : memref<80x16xbf16, #tpu.memory_space<vmem>>, vector<64x16xbf16>
    %c0_3 = arith.constant 0 : index
    %c0_4 = arith.constant 0 : index
    %c0_5 = arith.constant 0 : index
    %2 = vector.load %arg2[%c0_3, %c0_4, %c0_5] : memref<9x16x8xbf16, #tpu.memory_space<vmem>>, vector<1x16x8xbf16>
    %3 = vector.shape_cast %2 : vector<1x16x8xbf16> to vector<16x8xbf16>
    %cst = arith.constant dense<0.000000e+00> : vector<64x8xf32>
    %4 = tpu.matmul %1, %3, %cst {dimension_numbers = #tpu.dot_dimension_numbers<[1], [0], [0], [1], [0, 0, 1, 1], [], []>} : vector<64x16xbf16>, vector<16x8xbf16>, vector<64x8xf32> -> vector<64x8xf32>
    %c1 = arith.constant 1 : index
    %c0_6 = arith.constant 0 : index
    %5 = vector.load %arg1[%c1, %c0_6] : memref<80x16xbf16, #tpu.memory_space<vmem>>, vector<64x16xbf16>
    %c1_7 = arith.constant 1 : index
    %c0_8 = arith.constant 0 : index
    %c0_9 = arith.constant 0 : index
    %6 = vector.load %arg2[%c1_7, %c0_8, %c0_9] : memref<9x16x8xbf16, #tpu.memory_space<vmem>>, vector<1x16x8xbf16>
    %7 = vector.shape_cast %6 : vector<1x16x8xbf16> to vector<16x8xbf16>
    %cst_10 = arith.constant dense<0.000000e+00> : vector<64x8xf32>
    %8 = tpu.matmul %5, %7, %cst_10 {dimension_numbers = #tpu.dot_dimension_numbers<[1], [0], [0], [1], [0, 0, 1, 1], [], []>} : vector<64x16xbf16>, vector<16x8xbf16>, vector<64x8xf32> -> vector<64x8xf32>
    %9 = arith.addf %4, %8 : vector<64x8xf32>
    %c2 = arith.constant 2 : index
    %c0_11 = arith.constant 0 : index
    %10 = vector.load %arg1[%c2, %c0_11] : memref<80x16xbf16, #tpu.memory_space<vmem>>, vector<64x16xbf16>
    %c2_12 = arith.constant 2 : index
    %c0_13 = arith.constant 0 : index
    %c0_14 = arith.constant 0 : index
    %11 = vector.load %arg2[%c2_12, %c0_13, %c0_14] : memref<9x16x8xbf16, #tpu.memory_space<vmem>>, vector<1x16x8xbf16>
    %12 = vector.shape_cast %11 : vector<1x16x8xbf16> to vector<16x8xbf16>
    %cst_15 = arith.constant dense<0.000000e+00> : vector<64x8xf32>
    %13 = tpu.matmul %10, %12, %cst_15 {dimension_numbers = #tpu.dot_dimension_numbers<[1], [0], [0], [1], [0, 0, 1, 1], [], []>} : vector<64x16xbf16>, vector<16x8xbf16>, vector<64x8xf32> -> vector<64x8xf32>
    %14 = arith.addf %9, %13 : vector<64x8xf32>
    %c7 = arith.constant 7 : index
    %c0_16 = arith.constant 0 : index
    %15 = vector.load %arg1[%c7, %c0_16] : memref<80x16xbf16, #tpu.memory_space<vmem>>, vector<64x16xbf16>
    %c3 = arith.constant 3 : index
    %c0_17 = arith.constant 0 : index
    %c0_18 = arith.constant 0 : index
    %16 = vector.load %arg2[%c3, %c0_17, %c0_18] : memref<9x16x8xbf16, #tpu.memory_space<vmem>>, vector<1x16x8xbf16>
    %17 = vector.shape_cast %16 : vector<1x16x8xbf16> to vector<16x8xbf16>
    %cst_19 = arith.constant dense<0.000000e+00> : vector<64x8xf32>
    %18 = tpu.matmul %15, %17, %cst_19 {dimension_numbers = #tpu.dot_dimension_numbers<[1], [0], [0], [1], [0, 0, 1, 1], [], []>} : vector<64x16xbf16>, vector<16x8xbf16>, vector<64x8xf32> -> vector<64x8xf32>
    %19 = arith.addf %14, %18 : vector<64x8xf32>
    %c8 = arith.constant 8 : index
    %c0_20 = arith.constant 0 : index
    %20 = vector.load %arg1[%c8, %c0_20] : memref<80x16xbf16, #tpu.memory_space<vmem>>, vector<64x16xbf16>
    %c4 = arith.constant 4 : index
    %c0_21 = arith.constant 0 : index
    %c0_22 = arith.constant 0 : index
    %21 = vector.load %arg2[%c4, %c0_21, %c0_22] : memref<9x16x8xbf16, #tpu.memory_space<vmem>>, vector<1x16x8xbf16>
    %22 = vector.shape_cast %21 : vector<1x16x8xbf16> to vector<16x8xbf16>
    %cst_23 = arith.constant dense<0.000000e+00> : vector<64x8xf32>
    %23 = tpu.matmul %20, %22, %cst_23 {dimension_numbers = #tpu.dot_dimension_numbers<[1], [0], [0], [1], [0, 0, 1, 1], [], []>} : vector<64x16xbf16>, vector<16x8xbf16>, vector<64x8xf32> -> vector<64x8xf32>
    %24 = arith.addf %19, %23 : vector<64x8xf32>
    %c9 = arith.constant 9 : index
    %c0_24 = arith.constant 0 : index
    %25 = vector.load %arg1[%c9, %c0_24] : memref<80x16xbf16, #tpu.memory_space<vmem>>, vector<64x16xbf16>
    %c5 = arith.constant 5 : index
    %c0_25 = arith.constant 0 : index
    %c0_26 = arith.constant 0 : index
    %26 = vector.load %arg2[%c5, %c0_25, %c0_26] : memref<9x16x8xbf16, #tpu.memory_space<vmem>>, vector<1x16x8xbf16>
    %27 = vector.shape_cast %26 : vector<1x16x8xbf16> to vector<16x8xbf16>
    %cst_27 = arith.constant dense<0.000000e+00> : vector<64x8xf32>
    %28 = tpu.matmul %25, %27, %cst_27 {dimension_numbers = #tpu.dot_dimension_numbers<[1], [0], [0], [1], [0, 0, 1, 1], [], []>} : vector<64x16xbf16>, vector<16x8xbf16>, vector<64x8xf32> -> vector<64x8xf32>
    %29 = arith.addf %24, %28 : vector<64x8xf32>
    %c14 = arith.constant 14 : index
    %c0_28 = arith.constant 0 : index
    %30 = vector.load %arg1[%c14, %c0_28] : memref<80x16xbf16, #tpu.memory_space<vmem>>, vector<64x16xbf16>
    %c6 = arith.constant 6 : index
    %c0_29 = arith.constant 0 : index
    %c0_30 = arith.constant 0 : index
    %31 = vector.load %arg2[%c6, %c0_29, %c0_30] : memref<9x16x8xbf16, #tpu.memory_space<vmem>>, vector<1x16x8xbf16>
    %32 = vector.shape_cast %31 : vector<1x16x8xbf16> to vector<16x8xbf16>
    %cst_31 = arith.constant dense<0.000000e+00> : vector<64x8xf32>
    %33 = tpu.matmul %30, %32, %cst_31 {dimension_numbers = #tpu.dot_dimension_numbers<[1], [0], [0], [1], [0, 0, 1, 1], [], []>} : vector<64x16xbf16>, vector<16x8xbf16>, vector<64x8xf32> -> vector<64x8xf32>
    %34 = arith.addf %29, %33 : vector<64x8xf32>
    %c15 = arith.constant 15 : index
    %c0_32 = arith.constant 0 : index
    %35 = vector.load %arg1[%c15, %c0_32] : memref<80x16xbf16, #tpu.memory_space<vmem>>, vector<64x16xbf16>
    %c7_33 = arith.constant 7 : index
    %c0_34 = arith.constant 0 : index
    %c0_35 = arith.constant 0 : index
    %36 = vector.load %arg2[%c7_33, %c0_34, %c0_35] : memref<9x16x8xbf16, #tpu.memory_space<vmem>>, vector<1x16x8xbf16>
    %37 = vector.shape_cast %36 : vector<1x16x8xbf16> to vector<16x8xbf16>
    %cst_36 = arith.constant dense<0.000000e+00> : vector<64x8xf32>
    %38 = tpu.matmul %35, %37, %cst_36 {dimension_numbers = #tpu.dot_dimension_numbers<[1], [0], [0], [1], [0, 0, 1, 1], [], []>} : vector<64x16xbf16>, vector<16x8xbf16>, vector<64x8xf32> -> vector<64x8xf32>
    %39 = arith.addf %34, %38 : vector<64x8xf32>
    %c16 = arith.constant 16 : index
    %c0_37 = arith.constant 0 : index
    %40 = vector.load %arg1[%c16, %c0_37] : memref<80x16xbf16, #tpu.memory_space<vmem>>, vector<64x16xbf16>
    %c8_38 = arith.constant 8 : index
    %c0_39 = arith.constant 0 : index
    %c0_40 = arith.constant 0 : index
    %41 = vector.load %arg2[%c8_38, %c0_39, %c0_40] : memref<9x16x8xbf16, #tpu.memory_space<vmem>>, vector<1x16x8xbf16>
    %42 = vector.shape_cast %41 : vector<1x16x8xbf16> to vector<16x8xbf16>
    %cst_41 = arith.constant dense<0.000000e+00> : vector<64x8xf32>
    %43 = tpu.matmul %40, %42, %cst_41 {dimension_numbers = #tpu.dot_dimension_numbers<[1], [0], [0], [1], [0, 0, 1, 1], [], []>} : vector<64x16xbf16>, vector<16x8xbf16>, vector<64x8xf32> -> vector<64x8xf32>
    %44 = arith.addf %39, %43 : vector<64x8xf32>
    %45 = vector.broadcast %0 : vector<1x8xf32> to vector<64x8xf32>
    %46 = arith.addf %44, %45 : vector<64x8xf32>
    %c0_42 = arith.constant 0 : index
    %c0_43 = arith.constant 0 : index
    %47 = vector.load %arg4[%c0_42, %c0_43] : memref<64x8xf32, #tpu.memory_space<vmem>>, vector<64x8xf32>
    tpu.vector_store %arg4[%c0_42, %c0_43], %46 {strides = array<i32>} : memref<64x8xf32, #tpu.memory_space<vmem>>, vector<64x8xf32>,
    return
  }
  func.func @transform_0(%arg0: i32) -> (i32, i32) {
    %c0_i32 = arith.constant 0 : i32
    %c0_i32_0 = arith.constant 0 : i32
    %c0_i32_1 = arith.constant 0 : i32
    return %c0_i32, %c0_i32_0 : i32, i32
  }
  func.func @transform_1(%arg0: i32) -> (i32, i32, i32) {
    %c0_i32 = arith.constant 0 : i32
    %c0_i32_0 = arith.constant 0 : i32
    %c0_i32_1 = arith.constant 0 : i32
    return %c0_i32, %c0_i32_0, %arg0 : i32, i32, i32
  }
  func.func @transform_2(%arg0: i32) -> (i32, i32) {
    %c0_i32 = arith.constant 0 : i32
    %c0_i32_0 = arith.constant 0 : i32
    return %c0_i32, %arg0 : i32, i32
  }
  func.func @transform_3(%arg0: i32) -> (i32, i32) {
    %c0_i32 = arith.constant 0 : i32
    %c0_i32_0 = arith.constant 0 : i32
    return %c0_i32, %arg0 : i32, i32
  }
}

</mosaic_0001>

<bundles_post_ra>
// kernel: tpu_custom_call.1
= control target key start
LH: loop header
LB: loop body
LE: loop exit
PB: predicated region body
PF: predicated region fallthrough
CT: control target
= control target key end

     0   :  { %vm53_vm0 = vsmask.f32 7424  ;;  %vm96_vm1 = vcmask 130048   ;;  %vm260_vm2 = vcmask 1046528   ;;  %vm372_vm3 = vsmask.f32 4352  ;;  %s1712_s1 = inlined_call_operand.vmem [shape: bf16[9,16,8], index: 1, kind: input, shape index: {}]   ;;  %s1713_s0 = inlined_call_operand.vmem [shape: bf16[80,16], index: 0, kind: input, shape index: {}]   ;;  %s1714_s2 = inlined_call_operand.vmem [shape: f32[1,8], index: 2, kind: input, shape index: {}]   ;;  %s1715_s3 = inlined_call_operand.vmem [shape: f32[64,8], index: 3, kind: output, shape index: {}]  }
   0x1   :  { %v1340_v0 = vld [vmem:[%s1712_s1 + $0x8] sm:$0xff]   ;;  %v16_v1 = vld [vmem:[%s1713_s0] sm:$0xf]  ;;  %v1402_v2 = vld [vmem:[%s1713_s0 + $0x4] sm:$0xf]  ;;  %vm764_vm4 = vcmask 1044480  }
   0x2   :  { %v1407_v3 = vld [vmem:[%s1713_s0 + $0x8] sm:$0xf]  ;;  %1338 = vmatprep.subr.bf16.mxu1 %v1340_v0  ;;  %1248 = vmatprep.subr.bf16.mxu0 %v1340_v0  ;;  %v1412_v4 = vld [vmem:[%s1713_s0 + $0xc] sm:$0xf]  ;;  %v1119_v5 = vcombine.low %v16_v1, %v1402_v2  ;;  %v1418_v6 = vld [vmem:[%s1713_s0 + $0x10] sm:$0xf] }
   0x3   :  { %v1423_v7 = vld [vmem:[%s1713_s0 + $0x14] sm:$0xf]  ;;  %1339 = vmatpush3.bf16.msra.mxu1 %v1340_v0  ;;  %1249 = vmatpush3.bf16.msra.mxu0 %v1340_v0  ;;  %v1427_v8 = vcombine.low %v1407_v3, %v1412_v4  ;;  %v1432_v9 = vld [vmem:[%s1713_s0 + $0x18] sm:$0xf]  ;;  %v1437_v10 = vld [vmem:[%s1713_s0 + $0x1c] sm:$0xf]  ;;  %v1153_v0 = vcombine.low %v1402_v2, %v1407_v3 }
   0x4   :  { %v1441_v11 = vcombine.low %v1418_v6, %v1423_v7  ;;  %v55_v12 = vshrl.u32 %v1119_v5, 16  ;;  %v57_v13 = vshll.u32 %v1119_v5, 16  ;;  %v1445_v14 = vcombine.low %v1432_v9, %v1437_v10  ;;  %v1346_v15 = vld [vmem:[%s1712_s1] sm:$0xff]   ;;  %v1348_v16 = vld [vmem:[%s1712_s1 + $0x10] sm:$0xff]   ;;  %v1350_v43 = vld [vmem:[%s1712_s1 + $0x18] sm:$0xff]  }
   0x5   :  { %v62_v17 = vshll.u32 %v1427_v8, 16  ;;  %v66_v18 = vshrl.u32 %v1427_v8, 16  ;;  %1258 = vmatprep.subr.bf16.mxu1 %v1346_v15  ;;  %v1462_v24 = vld [vmem:[%s1713_s0 + $0x20] ss:$0 sps:$4 sm:$0x11]   ;;  %1268 = vmatprep.subr.bf16.mxu0 %v1348_v16  ;;  %v262_v33 = vrot.slane %v1427_v8, 1 }
   0x6   :  { %v70_v19 = vshll.u32 %v1441_v11, 16  ;;  %v74_v20 = vshrl.u32 %v1441_v11, 16  ;;  %v59_v21 = vrot.slane %v57_v13, 1  ;;  %v78_v22 = vshll.u32 %v1445_v14, 16  ;;  %v253_v32 = vld [vmem:[%s1713_s0] sm:$0xe] }
   0x7   :  { %v82_v23 = vshrl.u32 %v1445_v14, 16  ;;  %v64_v25 = vrot.slane %v62_v17, 1  ;;  %v86_v31 = vshll.u32 %v1462_v24, 16  ;;  %v1136_v36 = vcombine.low %v253_v32, %v1402_v2  ;;  %v1351_v40 = vld [vmem:[%s1712_s1 + $0x20] sm:$0xff]   ;;  %v1355_v53 = vld [vmem:[%s1712_s1 + $0x30] sm:$0xff]   ;;  %v1354_v58 = vld [vmem:[%s1712_s1 + $0x28] sm:$0xff]  }
   0x8   :  { %v72_v26 = vrot.slane %v70_v19, 1  ;;  %v60_v27 = vor.u32 %v59_v21, %v55_v12  ;;  %v80_v28 = vrot.slane %v78_v22, 1  ;;  %v361_v41 = vld [vmem:[%s1713_s0] sm:$0x8]  ;;  %v264_v46 = vrot.slane %v1441_v11, 1 }
   0x9   :  { %v68_v29 = vor.u32 %v66_v18, %v64_v25  ;;  %v88_v39 = vrot.slane %v86_v31, 1  ;;  %v261_v42 = vrot.slane %v1136_v36, 1  ;;  %v1144_v44 = vcombine.low %v361_v41, %v1402_v2  ;;  %v1519_v62 = vld [vmem:[%s1713_s0 + $0x20] sm:$0xf]  ;;  %v591_v1 = vld [vmem:[%s1713_s0 + $0x4] sm:$0xf] }
   0xa   :  { %v76_v30 = vor.u32 %v74_v20, %v72_v26  ;;  %v65_v34 = vsel %vm53_vm0, %v60_v27, %v64_v25  ;;  %v84_v35 = vor.u32 %v82_v23, %v80_v28  ;;  %v266_v48 = vrot.slane %v1445_v14, 1  ;;  %v753_v21 = vld [vmem:[%s1713_s0 + $0x4] sm:$0x8] }
   0xb   :  { %1250 = vmatprep.mubr.msk.bf16.mxu0 %vm96_vm1, %v65_v34  ;;  %v73_v38 = vsel %vm53_vm0, %v68_v29, %v72_v26  ;;  %v263_v47 = vsel %vm260_vm2, %v261_v42, %v262_v33  ;;  %v374_v49 = vshrl.u32 %v1144_v44, 16  ;;  %v377_v50 = vshll.u32 %v1144_v44, 16  ;;  %v1365_v27 = vld [vmem:[%s1712_s1 + $0x40] sm:$0xff]   ;;  %v1595_v34 = vld [vmem:[%s1713_s0 + $0x1c] sm:$0xf] }
   0xc   :  { %v81_v37 = vsel %vm53_vm0, %v76_v30, %v80_v28  ;;  %1251 = vmatmul.mubr.msk.bf16.vlgmr.msra.gmra.mxu0 %vm96_vm1, %v73_v38  ;;  %v89_v45 = vsel %vm53_vm0, %v84_v35, %v88_v39  ;;  %v265_v51 = vsel %vm260_vm2, %v262_v33, %v264_v46  ;;  %v267_v52 = vsel %vm260_vm2, %v264_v46, %v266_v48  ;;  %v1364_v33 = vld [vmem:[%s1712_s1 + $0x38] sm:$0xff]   ;;  %v1600_v35 = vld [vmem:[%s1713_s0 + $0x20] sm:$0xf] }
   0xd   :  { %1254 = vmatprep.mubr.msk.bf16.mxu1 %vm96_vm1, %v81_v37  ;;  %1269 = vmatpush3.bf16.msra.mxu0 %v1348_v16  ;;  %v382_v54 = vrot.slane %v62_v17, 4  ;;  %v376_v55 = vrot.slane %v374_v49, 3  ;;  %v379_v56 = vrot.slane %v377_v50, 4  ;;  %v381_v57 = vrot.slane %v66_v18, 3  ;;  %v1554_v17 = vld [vmem:[%s1713_s0 + $0x10] sm:$0xf] }
   0xe   :  { %1255 = vmatmul.mubr.msk.bf16.vlgmr.msra.gmra.mxu1 %vm96_vm1, %v89_v45  ;;  %1288 = vmatprep.subr.bf16.mxu0 %v1351_v40  ;;  %v268_v59 = vrot.slane %v1462_v24, 1  ;;  %v386_v12 = vrot.slane %v70_v19, 4  ;;  %v1145_v13 = vcombine.low %v1519_v62, %v1519_v62  ;;  %v390_v2 = vrot.slane %v78_v22, 4 }
   0xf   :  { %1259 = vmatpush3.bf16.msra.mxu1 %v1346_v15  ;;  %1260 = vmatprep.mubr.msk.bf16.mxu1 %vm96_vm1, %v1119_v5  ;;  %v380_v60 = vor.u32 %v379_v56, %v376_v55  ;;  %v383_v61 = vor.u32 %v382_v54, %v381_v57  ;;  %v1530_v5 = vld [vmem:[%s1713_s0 + $0x8] sm:$0xf]  ;;  %v389_v15 = vrot.slane %v82_v23, 3  ;;  %v1154_v22 = vcombine.low %v1412_v4, %v1418_v6  ;;  %v1578_v4 = vld [vmem:[%s1713_s0 + $0x14] sm:$0xf] }
  0x10   :  { %1270 = vmatprep.mubr.msk.bf16.mxu0 %vm96_vm1, %v263_v47  ;;  %1278 = vmatprep.subr.bf16.mxu1 %v1350_v43  ;;  %v269_v63 = vsel %vm260_vm2, %v266_v48, %v268_v59  ;;  %v1164_v16 = vcombine.low %v591_v1, %v1530_v5  ;;  %v394_v19 = vshrl.u32 %v1145_v13, 16  ;;  %v1176_v26 = vcombine.low %v753_v21, %v1530_v5  ;;  %v1583_v6 = vld [vmem:[%s1713_s0 + $0x18] sm:$0xf]  ;;  %v1367_v54 = vld [vmem:[%s1713_s0 + $0x24] ss:$0 sps:$4 sm:$0x11]  }
  0x11   :  { %v384_v3 = vsel %vm372_vm3, %v380_v60, %v383_v61  ;;  %v391_v23 = vor.u32 %v390_v2, %v389_v15  ;;  %v1166_v36 = vcombine.low %v1578_v4, %v1583_v6  ;;  %v1368_v60 = vld [vmem:[%s1713_s0 + $0x24] ss:$0 sps:$4 sm:$0x77]   ;;  %vm1104_vm5 = vcmask 64512  }
  0x12   :  { %v629_v25 = vshll.u32 %v1164_v16, 16  ;;  %v396_v29 = vrot.slane %v394_v19, 3  ;;  %v765_v37 = vrot.slane %v1176_v26, 3  ;;  %v873_v57 = vshrl.u32 %v1176_v26, 16 }
  0x13   :  { %v642_v45 = vshll.u32 %v1166_v36, 16  ;;  %v646_v49 = vshrl.u32 %v1166_v36, 16 }
  0x14   :  { %1271 = vmatmul.mubr.msk.bf16.vlgmr.msra.gmra.mxu0 %vm96_vm1, %v265_v51  ;;  %v631_v31 = vrot.slane %v629_v25, 1 }
  0x15   :  { %1289 = vmatpush3.bf16.msra.mxu0 %v1351_v40  ;;  %1274 = vmatprep.mubr.msk.bf16.mxu0 %vm96_vm1, %v267_v52  ;;  %v1156_v40 = vcombine.low %v1437_v10, %v1519_v62  ;;  %v768_v10 = vrot.slane %v1166_v36, 3  ;;  %v644_v51 = vrot.slane %v642_v45, 1  ;;  %v885_v25 = vrot.slane %v642_v45, 4 }
  0x16   :  { %1261 = vmatmul.mubr.msk.bf16.vlgmr.msra.gmra.mxu1 %vm96_vm1, %v1427_v8  ;;  %1308 = vmatprep.subr.bf16.mxu0 %v1355_v53  ;;  %v385_v8 = vrot.slane %v74_v20, 3  ;;  %v397_v20 = vshll.u32 %v1145_v13, 16 }
  0x17   :  { %1279 = vmatpush3.bf16.msra.mxu1 %v1350_v43  ;;  %1264 = vmatprep.mubr.msk.bf16.mxu1 %vm96_vm1, %v1441_v11  ;;  %v1549_v11 = vld [vmem:[%s1713_s0 + $0xc] sm:$0xf]  ;;  %v1167_v43 = vcombine.low %v1595_v34, %v1600_v35  ;;  %v648_v55 = vor.u32 %v646_v49, %v644_v51 }
  0x18   :  { %1298 = vmatprep.subr.bf16.mxu1 %v1354_v58  ;;  %v387_v18 = vor.u32 %v386_v12, %v385_v8  ;;  %v1566_v24 = vcombine.low %v1549_v11, %v1554_v17  ;;  %v399_v30 = vrot.slane %v397_v20, 4  ;;  %v875_v12 = vrot.slane %v873_v57, 3  ;;  %v865_v20 = vld [vmem:[%s1713_s0 + $0x24] sm:$0xf] }
  0x19   :  { %v650_v50 = vshll.u32 %v1167_v43, 16  ;;  %v770_v52 = vrot.slane %v1167_v43, 3 }
  0x1a   :  { %v388_v28 = vsel %vm372_vm3, %v383_v61, %v387_v18  ;;  %v634_v32 = vshll.u32 %v1566_v24, 16  ;;  %v766_v38 = vrot.slane %v1566_v24, 3  ;;  %v400_v39 = vor.u32 %v399_v30, %v396_v29 }
  0x1b   :  { %v638_v47 = vshrl.u32 %v1566_v24, 16  ;;  %v652_v56 = vrot.slane %v650_v50, 1  ;;  %v771_v61 = vsel %vm764_vm4, %v768_v10, %v770_v52 }
  0x1c   :  { %1275 = vmatmul.mubr.msk.bf16.gmra.mxu0 %vm96_vm1, %v269_v63  ;;  %v636_v42 = vrot.slane %v634_v32, 1  ;;  %v767_v44 = vsel %vm764_vm4, %v765_v37, %v766_v38  ;;  %v401_v46 = vsel %vm372_vm3, %v391_v23, %v400_v39  ;;  %v769_v59 = vsel %vm764_vm4, %v766_v38, %v768_v10 }
  0x1d   :  { %1290 = vmatprep.mubr.msk.bf16.mxu0 %vm96_vm1, %v1153_v0  ;;  %v654_v63 = vshrl.u32 %v1167_v43, 16  ;;  %v658_v0 = vshll.u32 %v1367_v54, 16  ;;  %v880_v1 = vrot.slane %v638_v47, 3  ;;  %v653_v8 = vsel %vm53_vm0, %v648_v55, %v652_v56 }
  0x1e   :  { %1265 = vmatmul.mubr.msk.bf16.gmra.mxu1 %vm96_vm1, %v1445_v14  ;;  %v1155_v14 = vcombine.low %v1423_v7, %v1432_v9  ;;  %v392_v7 = vsel %vm372_vm3, %v387_v18, %v391_v23  ;;  %v627_v9 = vshrl.u32 %v1164_v16, 16  ;;  %v881_v2 = vrot.slane %v634_v32, 4 }
  0x1f   :  { %1280 = vmatprep.mubr.msk.bf16.mxu1 %vm96_vm1, %v384_v3  ;;  %v772_v3 = vrot.slane %v1368_v60, 3  ;;  %v656_v15 = vor.u32 %v654_v63, %v652_v56  ;;  %v660_v16 = vrot.slane %v658_v0, 1  ;;  %v884_v23 = vrot.slane %v646_v49, 3 }
  0x20   :  { %v632_v41 = vor.u32 %v631_v31, %v627_v9  ;;  %v882_v19 = vor.u32 %v881_v2, %v880_v1  ;;  %v1195_v9 = vcombine.low %v1583_v6, %v1595_v34 }
  0x21   :  { %v773_v21 = vsel %vm764_vm4, %v770_v52, %v772_v3  ;;  %v661_v24 = vsel %vm53_vm0, %v656_v15, %v660_v16  ;;  %v886_v29 = vor.u32 %v885_v25, %v884_v23 }
  0x22   :  { %v637_v48 = vsel %vm53_vm0, %v632_v41, %v636_v42 }
  0x23   :  { %v887_v31 = vsel %vm372_vm3, %v882_v19, %v886_v29 }
  0x24   :  { %1291 = vmatmul.mubr.msk.bf16.vlgmr.msra.gmra.mxu0 %vm96_vm1, %v1154_v22  ;;  %v1193_v22 = vcombine.low %v1530_v5, %v1549_v11  ;;  %v1194_v11 = vcombine.low %v1554_v17, %v1578_v4  ;;  %v1196_v17 = vcombine.low %v1600_v35, %v865_v20 }
  0x25   :  { %1309 = vmatpush3.bf16.msra.mxu0 %v1355_v53  ;;  %1294 = vmatprep.mubr.msk.bf16.mxu0 %vm96_vm1, %v1155_v14  ;;  %v640_v53 = vor.u32 %v638_v47, %v636_v42  ;;  %v1185_v14 = vcombine.low %v865_v20, %v865_v20 }
  0x26   :  { %1281 = vmatmul.mubr.msk.bf16.vlgmr.msra.gmra.mxu1 %vm96_vm1, %v388_v28  ;;  %1328 = vmatprep.subr.bf16.mxu0 %v1365_v27  ;;  %v889_v28 = vrot.slane %v650_v50, 4 }
  0x27   :  { %1299 = vmatpush3.bf16.msra.mxu1 %v1354_v58  ;;  %1284 = vmatprep.mubr.msk.bf16.mxu1 %vm96_vm1, %v392_v7  ;;  %v876_v58 = vshll.u32 %v1176_v26, 16  ;;  %v645_v62 = vsel %vm53_vm0, %v640_v53, %v644_v51  ;;  %v893_v30 = vshrl.u32 %v1185_v14, 16  ;;  %v896_v5 = vshll.u32 %v1185_v14, 16 }
  0x28   :  { %1318 = vmatprep.subr.bf16.mxu1 %v1364_v33 }
  0x29   :  { %v878_v13 = vrot.slane %v876_v58, 4  ;;  %v895_v32 = vrot.slane %v893_v30, 3 }
  0x2b   :  { %v879_v18 = vor.u32 %v878_v13, %v875_v12 }
  0x2c   :  { %1295 = vmatmul.mubr.msk.bf16.gmra.mxu0 %vm96_vm1, %v1156_v40 }
  0x2d   :  { %1310 = vmatprep.mubr.msk.bf16.mxu0 %vm96_vm1, %v767_v44  ;;  %v883_v26 = vsel %vm372_vm3, %v879_v18, %v882_v19 }
  0x2e   :  { %1285 = vmatmul.mubr.msk.bf16.gmra.mxu1 %vm96_vm1, %v401_v46 }
  0x2f   :  { %1300 = vmatprep.mubr.msk.bf16.mxu1 %vm96_vm1, %v637_v48 }
  0x34   :  { %1311 = vmatmul.mubr.msk.bf16.vlgmr.msra.gmra.mxu0 %vm96_vm1, %v769_v59 }
  0x35   :  { %1329 = vmatpush3.bf16.msra.mxu0 %v1365_v27  ;;  %1314 = vmatprep.mubr.msk.bf16.mxu0 %vm96_vm1, %v771_v61  ;;  %v888_v27 = vrot.slane %v654_v63, 3 }
  0x36   :  { %1301 = vmatmul.mubr.msk.bf16.vlgmr.msra.gmra.mxu1 %vm96_vm1, %v645_v62 }
  0x37   :  { %1319 = vmatpush3.bf16.msra.mxu1 %v1364_v33  ;;  %1304 = vmatprep.mubr.msk.bf16.mxu1 %vm96_vm1, %v653_v8  ;;  %v890_v7 = vor.u32 %v889_v28, %v888_v27  ;;  %v898_v33 = vrot.slane %v896_v5, 4 }
  0x39   :  { %v891_v36 = vsel %vm372_vm3, %v886_v29, %v890_v7  ;;  %v899_v37 = vor.u32 %v898_v33, %v895_v32 }
  0x3b   :  { %v900_v4 = vsel %vm372_vm3, %v890_v7, %v899_v37 }
  0x3c   :  { %1315 = vmatmul.mubr.msk.bf16.gmra.mxu0 %vm96_vm1, %v773_v21 }
  0x3d   :  { %1330 = vmatprep.mubr.msk.bf16.mxu0 %vm96_vm1, %v1193_v22 }
  0x3e   :  { %1305 = vmatmul.mubr.msk.bf16.gmra.mxu1 %vm96_vm1, %v661_v24 }
  0x3f   :  { %1320 = vmatprep.mubr.msk.bf16.mxu1 %vm96_vm1, %v883_v26 }
  0x44   :  { %1331 = vmatmul.mubr.msk.bf16.vlgmr.msra.gmra.mxu0 %vm96_vm1, %v1194_v11 }
  0x45   :  { %1334 = vmatprep.mubr.msk.bf16.mxu0 %vm96_vm1, %v1195_v9 }
  0x46   :  { %1321 = vmatmul.mubr.msk.bf16.vlgmr.msra.gmra.mxu1 %vm96_vm1, %v887_v31 }
  0x47   :  { %1324 = vmatprep.mubr.msk.bf16.mxu1 %vm96_vm1, %v891_v36 }
  0x4c   :  { %1335 = vmatmul.mubr.msk.bf16.gmra.mxu0 %vm96_vm1, %v1196_v17 }
  0x4e   :  { %1325 = vmatmul.mubr.msk.bf16.gmra.mxu1 %vm96_vm1, %v900_v4 }
  0xcc   :  { %v1252_v6 = vpop.f32.mrf.mxu0 }
  0xce   :  { %v1256_v34 = vpop.f32.mrf.mxu1  ;;  %v143_v38 = vpop.f32.mrf.mxu0 }
  0xd0   :  { %v159_v39 = vpop.f32.mrf.mxu1  ;;  %v1253_v40 = vpop.f32.mrf.mxu0 }
  0xd2   :  { %v1257_v41 = vpop.f32.mrf.mxu1  ;;  %v146_v42 = vpop.f32.mrf.mxu0 }
  0xd4   :  { %v1659_v43 = vpop.f32.mrf.mxu1  ;;  %v1272_v44 = vpop.f32.mrf.mxu0 }
  0xd6   :  { %v1262_v45 = vpop.f32.mrf.mxu1  ;;  %v322_v46 = vpop.f32.mrf.mxu0 }
  0xd7   :  { %v231_v20 = vadd.f32 %v1262_v45, %v1252_v6 }
  0xd8   :  { %v222_v47 = vpop.f32.mrf.mxu1  ;;  %v1273_v35 = vpop.f32.mrf.mxu0 }
  0xd9   :  { %v223_v23 = vadd.f32 %v222_v47, %v143_v38  ;;  %v355_v14 = vadd.f32 %v1272_v44, %v231_v20 }
  0xda   :  { %v1263_v48 = vpop.f32.mrf.mxu1  ;;  %v325_v49 = vpop.f32.mrf.mxu0 }
  0xdb   :  { %v234_v26 = vadd.f32 %v1263_v48, %v1253_v40  ;;  %v353_v29 = vadd.f32 %v322_v46, %v223_v23 }
  0xdc   :  { %v225_v50 = vpop.f32.mrf.mxu1  ;;  %v1276_v10 = vpop.f32.mrf.mxu0 }
  0xdd   :  { %v226_v30 = vadd.f32 %v225_v50, %v146_v42  ;;  %v356_v31 = vadd.f32 %v1273_v35, %v234_v26 }
  0xde   :  { %v1266_v51 = vpop.f32.mrf.mxu1  ;;  %v338_v52 = vpop.f32.mrf.mxu0 }
  0xdf   :  { %v247_v11 = vadd.f32 %v1266_v51, %v1256_v34  ;;  %v354_v17 = vadd.f32 %v325_v49, %v226_v30 }
  0xe0   :  { %v238_v53 = vpop.f32.mrf.mxu1  ;;  %v1277_v54 = vpop.f32.mrf.mxu0 }
  0xe1   :  { %v239_v33 = vadd.f32 %v238_v53, %v159_v39  ;;  %v359_v38 = vadd.f32 %v1276_v10, %v247_v11 }
  0xe2   :  { %v1267_v55 = vpop.f32.mrf.mxu1  ;;  %v1661_v56 = vpop.f32.mrf.mxu0 }
  0xe3   :  { %v250_v45 = vadd.f32 %v1267_v55, %v1257_v41  ;;  %v357_v48 = vadd.f32 %v338_v52, %v239_v33 }
  0xe4   :  { %v241_v57 = vpop.f32.mrf.mxu1  ;;  %v1292_v58 = vpop.f32.mrf.mxu0 }
  0xe5   :  { %v242_v34 = vadd.f32 %v241_v57, %v1659_v43  ;;  %v360_v49 = vadd.f32 %v1277_v54, %v250_v45  ;;  %v1202_v54 = vld [vmem:[%s1714_s2] ss:$0 sm:$0xff] }
  0xe6   :  { %v1282_v59 = vpop.f32.mrf.mxu1  ;;  %v552_v60 = vpop.f32.mrf.mxu0 }
  0xe7   :  { %v487_v5 = vadd.f32 %v1282_v59, %v355_v14 }
  0xe8   :  { %v454_v61 = vpop.f32.mrf.mxu1  ;;  %v1293_v62 = vpop.f32.mrf.mxu0 }
  0xe9   :  { %v485_v32 = vadd.f32 %v454_v61, %v353_v29  ;;  %v585_v4 = vadd.f32 %v1292_v58, %v487_v5 }
  0xea   :  { %v1283_v63 = vpop.f32.mrf.mxu1  ;;  %v555_v0 = vpop.f32.mrf.mxu0 }
  0xeb   :  { %v488_v6 = vadd.f32 %v1283_v63, %v356_v31  ;;  %v583_v47 = vadd.f32 %v552_v60, %v485_v32  ;;  %v358_v60 = vadd.f32 %v1661_v56, %v242_v34 }
  0xec   :  { %v457_v1 = vpop.f32.mrf.mxu1  ;;  %v1296_v8 = vpop.f32.mrf.mxu0 }
  0xed   :  { %v486_v46 = vadd.f32 %v457_v1, %v354_v17  ;;  %v586_v39 = vadd.f32 %v1293_v62, %v488_v6 }
  0xee   :  { %v1286_v12 = vpop.f32.mrf.mxu1  ;;  %v568_v13 = vpop.f32.mrf.mxu0 }
  0xef   :  { %v491_v50 = vadd.f32 %v1286_v12, %v359_v38  ;;  %v584_v41 = vadd.f32 %v555_v0, %v486_v46 }
  0xf0   :  { %v470_v2 = vpop.f32.mrf.mxu1  ;;  %v1663_v3 = vpop.f32.mrf.mxu0 }
  0xf1   :  { %v489_v58 = vadd.f32 %v470_v2, %v357_v48  ;;  %v589_v63 = vadd.f32 %v1296_v8, %v491_v50 }
  0xf2   :  { %v1287_v15 = vpop.f32.mrf.mxu1  ;;  %v1665_v16 = vpop.f32.mrf.mxu0 }
  0xf3   :  { %v492_v1 = vadd.f32 %v1287_v15, %v360_v49 }
  0xf4   :  { %v473_v18 = vpop.f32.mrf.mxu1  ;;  %v1312_v19 = vpop.f32.mrf.mxu0 }
  0xf5   :  { %v490_v23 = vadd.f32 %v473_v18, %v358_v60  ;;  %v590_v56 = vadd.f32 %v1663_v3, %v492_v1 }
  0xf6   :  { %v1302_v21 = vpop.f32.mrf.mxu1  ;;  %v826_v22 = vpop.f32.mrf.mxu0 }
  0xf7   :  { %v747_v42 = vadd.f32 %v1302_v21, %v585_v4  ;;  %v587_v21 = vadd.f32 %v568_v13, %v489_v58  ;;  %v588_v29 = vadd.f32 %v1665_v16, %v490_v23 }
  0xf8   :  { %v714_v24 = vpop.f32.mrf.mxu1  ;;  %v1313_v25 = vpop.f32.mrf.mxu0 }
  0xf9   :  { %v745_v53 = vadd.f32 %v714_v24, %v583_v47  ;;  %v859_v55 = vadd.f32 %v1312_v19, %v747_v42 }
  0xfa   :  { %v1303_v27 = vpop.f32.mrf.mxu1  ;;  %v829_v28 = vpop.f32.mrf.mxu0 }
  0xfb   :  { %v748_v61 = vadd.f32 %v1303_v27, %v586_v39  ;;  %v857_v43 = vadd.f32 %v826_v22, %v745_v53 }
  0xfc   :  { %v717_v7 = vpop.f32.mrf.mxu1  ;;  %v1316_v9 = vpop.f32.mrf.mxu0 }
  0xfd   :  { %v746_v57 = vadd.f32 %v717_v7, %v584_v41  ;;  %v860_v19 = vadd.f32 %v1313_v25, %v748_v61 }
  0xfe   :  { %v1306_v36 = vpop.f32.mrf.mxu1  ;;  %v842_v37 = vpop.f32.mrf.mxu0 }
  0xff   :  { %v751_v62 = vadd.f32 %v1306_v36, %v589_v63  ;;  %v858_v26 = vadd.f32 %v829_v28, %v746_v57 }
 0x100   :  { %v730_v44 = vpop.f32.mrf.mxu1  ;;  %v1667_v40 = vpop.f32.mrf.mxu0 }
 0x101   :  { %v749_v8 = vadd.f32 %v730_v44, %v587_v21  ;;  %v863_v30 = vadd.f32 %v1316_v9, %v751_v62 }
 0x102   :  { %v1307_v35 = vpop.f32.mrf.mxu1  ;;  %v1670_v51 = vpop.f32.mrf.mxu0 }
 0x103   :  { %v752_v7 = vadd.f32 %v1307_v35, %v590_v56  ;;  %v861_v32 = vadd.f32 %v842_v37, %v749_v8 }
 0x104   :  { %v733_v59 = vpop.f32.mrf.mxu1  ;;  %v1332_v10 = vpop.f32.mrf.mxu0 }
 0x105   :  { %v750_v36 = vadd.f32 %v733_v59, %v588_v29  ;;  %v864_v6 = vadd.f32 %v1667_v40, %v752_v7 }
 0x106   :  { %v1322_v52 = vpop.f32.mrf.mxu1  ;;  %v1051_v20 = vpop.f32.mrf.mxu0 }
 0x107   :  { %v986_v12 = vadd.f32 %v1322_v52, %v859_v55  ;;  %v862_v46 = vadd.f32 %v1670_v51, %v750_v36 }
 0x108   :  { %v953_v2 = vpop.f32.mrf.mxu1  ;;  %v1333_v0 = vpop.f32.mrf.mxu0 }
 0x109   :  { %v1084_v24 = vadd.f32 %v1332_v10, %v986_v12  ;;  %v984_v14 = vadd.f32 %v953_v2, %v857_v43 }
 0x10a   :  { %v1323_v15 = vpop.f32.mrf.mxu1  ;;  %v1054_v22 = vpop.f32.mrf.mxu0 }
 0x10b   :  { %v1098_v27 = vadd.f32 %v1202_v54, %v1084_v24  ;;  %v1082_v13 = vadd.f32 %v1051_v20, %v984_v14  ;;  %v987_v18 = vadd.f32 %v1323_v15, %v860_v19 }
 0x10c   :  { %v956_v5 = vpop.f32.mrf.mxu1  ;;  %v1336_v11 = vpop.f32.mrf.mxu0 }
 0x10d   :  { %1107 = vst.msk [vmem:[%s1715_s3 + $0x10] sm:$0xff] %vm1104_vm5, %v1098_v27  ;;  %v1096_v3 = vadd.f32 %v1202_v54, %v1082_v13  ;;  %v1085_v25 = vadd.f32 %v1333_v0, %v987_v18  ;;  %v985_v31 = vadd.f32 %v956_v5, %v858_v26 }
 0x10e   :  { %v1326_v33 = vpop.f32.mrf.mxu1  ;;  %v1067_v28 = vpop.f32.mrf.mxu0 }
 0x10f   :  { %1105 = vst.msk [vmem:[%s1715_s3] sm:$0xff] %vm1104_vm5, %v1096_v3  ;;  %v1099_v16 = vadd.f32 %v1202_v54, %v1085_v25  ;;  %v1083_v9 = vadd.f32 %v1054_v22, %v985_v31  ;;  %v990_v17 = vadd.f32 %v1326_v33, %v863_v30 }
 0x110   :  { %v969_v4 = vpop.f32.mrf.mxu1  ;;  %v1337_v47 = vpop.f32.mrf.mxu0 }
 0x111   :  { %1108 = vst.msk [vmem:[%s1715_s3 + $0x18] sm:$0xff] %vm1104_vm5, %v1099_v16  ;;  %v1097_v37 = vadd.f32 %v1202_v54, %v1083_v9  ;;  %v1088_v38 = vadd.f32 %v1336_v11, %v990_v17  ;;  %v988_v45 = vadd.f32 %v969_v4, %v861_v32 }
 0x112   :  { %v1327_v44 = vpop.f32.mrf.mxu1  ;;  %v1070_v53 = vpop.f32.mrf.mxu0 }
 0x113   :  { %1106 = vst.msk [vmem:[%s1715_s3 + $0x8] sm:$0xff] %vm1104_vm5, %v1097_v37  ;;  %v1102_v42 = vadd.f32 %v1202_v54, %v1088_v38  ;;  %v1086_v48 = vadd.f32 %v1067_v28, %v988_v45  ;;  %v991_v40 = vadd.f32 %v1327_v44, %v864_v6 }
 0x114   :  { %v972_v34 = vpop.f32.mrf.mxu1 }
 0x115   :  { %1111 = vst.msk [vmem:[%s1715_s3 + $0x30] sm:$0xff] %vm1104_vm5, %v1102_v42  ;;  %v1100_v50 = vadd.f32 %v1202_v54, %v1086_v48  ;;  %v1089_v35 = vadd.f32 %v1337_v47, %v991_v40  ;;  %v989_v39 = vadd.f32 %v972_v34, %v862_v46 }
 0x117   :  { %1109 = vst.msk [vmem:[%s1715_s3 + $0x20] sm:$0xff] %vm1104_vm5, %v1100_v50  ;;  %v1103_v51 = vadd.f32 %v1202_v54, %v1089_v35  ;;  %v1087_v49 = vadd.f32 %v1070_v53, %v989_v39 }
 0x119   :  { %1112 = vst.msk [vmem:[%s1715_s3 + $0x38] sm:$0xff] %vm1104_vm5, %v1103_v51  ;;  %v1101_v58 = vadd.f32 %v1202_v54, %v1087_v49 }
 0x11b   :  { %1110 = vst.msk [vmem:[%s1715_s3 + $0x28] sm:$0xff] %vm1104_vm5, %v1101_v58 }

</bundles_post_ra>
